<compile_context>
chip_gen: v7x
topology: tpu7x:2x2x1
jax: 0.10.0
libtpu: 0.0.40
codegen_flags: <defaults>
</compile_context>

<pallas_src>
import jax
import jax.numpy as jnp
from jax.experimental import pallas as pl
from jax.experimental.pallas import tpu as pltpu


def linear_kernel(x_ref, wt_ref, b_ref, o_ref, acc_ref):
    # x_ref: (1, TK), wt_ref: (TK, TO), b_ref: (1, TO), o_ref: (1, TO)
    # acc_ref: (1, TO) f32 scratch, resident across the k (reduction) axis.
    k = pl.program_id(1)

    @pl.when(k == 0)
    def _init():
        acc_ref[...] = jnp.zeros_like(acc_ref)

    acc_ref[...] += jnp.dot(
        x_ref[...], wt_ref[...], preferred_element_type=jnp.float32
    )

    @pl.when(k == pl.num_programs(1) - 1)
    def _finalize():
        o_ref[...] = (acc_ref[...] + b_ref[...].astype(jnp.float32)).astype(o_ref.dtype)


def _pick_tile(dim, cap, align):
    """Largest tile <= cap that divides `dim` and is a multiple of `align`.
    Falls back to the full dimension (always a legal block)."""
    if dim <= cap:
        return dim
    t = (cap // align) * align
    while t >= align:
        if dim % t == 0:
            return t
        t -= align
    return dim


def linear_forward_wt(w_t, bias, x, *, to_cap=1024, tk_cap=1024):
    """w_t: (D, O) pre-transposed weights, bias: (O,), x: (D,) -> (O,)"""
    D, O = w_t.shape
    TO = _pick_tile(O, to_cap, 128)   # lane dim of W^T / out tiles
    TK = _pick_tile(D, tk_cap, 128)   # lane dim of x tile, sublane dim of W^T tile

    x_row = x.reshape(1, D)
    b_row = bias.reshape(1, O)
    grid = (O // TO, D // TK)         # (parallel O-tiles, arbitrary D-reduction)

    out = pl.pallas_call(
        linear_kernel,
        out_shape=jax.ShapeDtypeStruct((1, O), w_t.dtype),
        grid_spec=pltpu.PrefetchScalarGridSpec(
            num_scalar_prefetch=0,
            grid=grid,
            in_specs=[
                pl.BlockSpec((1, TK), lambda i, k: (0, k)),   # x: depends on k only
                pl.BlockSpec((TK, TO), lambda i, k: (k, i)),  # W^T tile (streamed)
                pl.BlockSpec((1, TO), lambda i, k: (0, i)),   # bias row tile
            ],
            out_specs=pl.BlockSpec((1, TO), lambda i, k: (0, i)),
            scratch_shapes=[pltpu.VMEM((1, TO), jnp.float32)],
        ),
        compiler_params=pltpu.CompilerParams(
            dimension_semantics=("parallel", "arbitrary"),
            vmem_limit_bytes=32 * 1024 * 1024,
        ),
    )(x_row, w_t, b_row)
    return out.reshape(O)


def linear_forward(weights, bias, x, *, to_cap=1024, tk_cap=1024):
    """weights: (O, D) (PyTorch convention), bias: (O,), x: (D,) -> (O,).

    Transposes weights once (layout plumbing) so the kernel sees a lane-dense
    (D, O) operand; a real model would store W^T at parameter-init time.
    """
    w_t = weights.T
    return linear_forward_wt(w_t, bias, x, to_cap=to_cap, tk_cap=tk_cap)


if __name__ == "__main__":
    # Small shapes consistent with Linear(input_dim, output_dim); tile caps are
    # shrunk so the demo exercises the full (O, D) grid + k-accumulation path.
    input_dim = 512
    output_dim = 256

    key = jax.random.PRNGKey(0)
    kw, kb, kx = jax.random.split(key, 3)
    weights = jax.random.normal(kw, (output_dim, input_dim), dtype=jnp.float32)
    bias = jax.random.normal(kb, (output_dim,), dtype=jnp.float32)
    x = jax.random.normal(kx, (input_dim,), dtype=jnp.float32)

    y = linear_forward(weights, bias, x, to_cap=128, tk_cap=256)  # grid = (2, 2)
    y = jax.block_until_ready(y)

    # Reference check (plain JAX)
    y_ref = weights @ x + bias
    assert y.shape == (output_dim,)
    assert jnp.allclose(y, y_ref, atol=1e-4, rtol=1e-4), "mismatch vs reference"

    print("KERNEL_OK")
</pallas_src>

<mosaic_0001>
module attributes {stable_mosaic.version = 11 : i64} {
  func.func @linear_kernel(%arg0: i32, %arg1: i32, %arg2: memref<1x256xf32, #tpu.memory_space<vmem>>, %arg3: memref<256x128xf32, #tpu.memory_space<vmem>>, %arg4: memref<1x128xf32, #tpu.memory_space<vmem>>, %arg5: memref<1x128xf32, #tpu.memory_space<vmem>>, %arg6: memref<1x128xf32, #tpu.memory_space<vmem>>) attributes {dimension_semantics = [#tpu.dimension_semantics<parallel>, #tpu.dimension_semantics<arbitrary>], iteration_bounds = array<i64: 2, 2>, scalar_prefetch = 0 : i64, scratch_operands = 1 : i64, tpu.core_type = #tpu.core_type<tc>, window_params = [{transform_indices = @transform_0, window_bounds = array<i64: 1, 256>}, {transform_indices = @transform_1, window_bounds = array<i64: 256, 128>}, {transform_indices = @transform_2, window_bounds = array<i64: 1, 128>}, {transform_indices = @transform_3, window_bounds = array<i64: 1, 128>}]} {
    %c0_i32 = arith.constant 0 : i32
    %0 = arith.cmpi eq, %arg1, %c0_i32 : i32
    %1 = arith.extui %0 : i1 to i32
    %c0_i32_0 = arith.constant 0 : i32
    %2 = arith.cmpi ne, %1, %c0_i32_0 : i32
    scf.if %2 {
      %cst_9 = arith.constant 0.000000e+00 : f32
      %12 = vector.broadcast %cst_9 : f32 to vector<1x128xf32>
      %c0_10 = arith.constant 0 : index
      %c0_11 = arith.constant 0 : index
      %13 = vector.load %arg6[%c0_10, %c0_11] : memref<1x128xf32, #tpu.memory_space<vmem>>, vector<1x128xf32>
      tpu.vector_store %arg6[%c0_10, %c0_11], %12 {strides = array<i32>} : memref<1x128xf32, #tpu.memory_space<vmem>>, vector<1x128xf32>,
    } else {
    }
    %c0 = arith.constant 0 : index
    %c0_1 = arith.constant 0 : index
    %3 = vector.load %arg6[%c0, %c0_1] : memref<1x128xf32, #tpu.memory_space<vmem>>, vector<1x128xf32>
    %c0_2 = arith.constant 0 : index
    %c0_3 = arith.constant 0 : index
    %4 = vector.load %arg2[%c0_2, %c0_3] : memref<1x256xf32, #tpu.memory_space<vmem>>, vector<1x256xf32>
    %c0_4 = arith.constant 0 : index
    %c0_5 = arith.constant 0 : index
    %5 = vector.load %arg3[%c0_4, %c0_5] : memref<256x128xf32, #tpu.memory_space<vmem>>, vector<256x128xf32>
    %cst = arith.constant dense<0.000000e+00> : vector<1x128xf32>
    %6 = tpu.matmul %4, %5, %cst {dimension_numbers = #tpu.dot_dimension_numbers<[1], [0], [0], [1], [0, 0, 1, 1], [], []>} : vector<1x256xf32>, vector<256x128xf32>, vector<1x128xf32> -> vector<1x128xf32>
    %7 = arith.addf %3, %6 : vector<1x128xf32>
    %c0_6 = arith.constant 0 : index
    %c0_7 = arith.constant 0 : index
    %8 = vector.load %arg6[%c0_6, %c0_7] : memref<1x128xf32, #tpu.memory_space<vmem>>, vector<1x128xf32>
    tpu.vector_store %arg6[%c0_6, %c0_7], %7 {strides = array<i32>} : memref<1x128xf32, #tpu.memory_space<vmem>>, vector<1x128xf32>,
    %c1_i32 = arith.constant 1 : i32
    %9 = arith.cmpi eq, %arg1, %c1_i32 : i32
    %10 = arith.extui %9 : i1 to i32
    %c0_i32_8 = arith.constant 0 : i32
    %11 = arith.cmpi ne, %10, %c0_i32_8 : i32
    scf.if %11 {
      %c0_9 = arith.constant 0 : index
      %c0_10 = arith.constant 0 : index
      %12 = vector.load %arg6[%c0_9, %c0_10] : memref<1x128xf32, #tpu.memory_space<vmem>>, vector<1x128xf32>
      %c0_11 = arith.constant 0 : index
      %c0_12 = arith.constant 0 : index
      %13 = vector.load %arg4[%c0_11, %c0_12] : memref<1x128xf32, #tpu.memory_space<vmem>>, vector<1x128xf32>
      %14 = arith.addf %12, %13 : vector<1x128xf32>
      %c0_13 = arith.constant 0 : index
      %c0_14 = arith.constant 0 : index
      %15 = vector.load %arg5[%c0_13, %c0_14] : memref<1x128xf32, #tpu.memory_space<vmem>>, vector<1x128xf32>
      tpu.vector_store %arg5[%c0_13, %c0_14], %14 {strides = array<i32>} : memref<1x128xf32, #tpu.memory_space<vmem>>, vector<1x128xf32>,
    } else {
    }
    return
  }
  func.func @transform_0(%arg0: i32, %arg1: i32) -> (i32, i32) {
    %c0_i32 = arith.constant 0 : i32
    %c0_i32_0 = arith.constant 0 : i32
    return %c0_i32, %arg1 : i32, i32
  }
  func.func @transform_1(%arg0: i32, %arg1: i32) -> (i32, i32) {
    %c0_i32 = arith.constant 0 : i32
    return %arg1, %arg0 : i32, i32
  }
  func.func @transform_2(%arg0: i32, %arg1: i32) -> (i32, i32) {
    %c0_i32 = arith.constant 0 : i32
    %c0_i32_0 = arith.constant 0 : i32
    return %c0_i32, %arg0 : i32, i32
  }
  func.func @transform_3(%arg0: i32, %arg1: i32) -> (i32, i32) {
    %c0_i32 = arith.constant 0 : i32
    %c0_i32_0 = arith.constant 0 : i32
    return %c0_i32, %arg0 : i32, i32
  }
}

</mosaic_0001>

<bundles_post_ra>
// kernel: tpu_custom_call.1
= control target key start
LH: loop header
LB: loop body
LE: loop exit
PB: predicated region body
PF: predicated region fallthrough
CT: control target
= control target key end

     0   :  { %s1366_s0 = inlined_call_operand.hbm [shape: f32[1,512], index: 0, kind: input, shape index: {}]   ;;  %s1367_s1 = inlined_call_operand.hbm [shape: f32[512,256], index: 1, kind: input, shape index: {}]   ;;  %s1368_s2 = inlined_call_operand.vmem [shape: f32[1,256], index: 2, kind: input, shape index: {}]   ;;  %s1369_s3 = inlined_call_operand.hbm [shape: f32[1,256], index: 3, kind: output, shape index: {}]  }
   0x1   :  { %1377 = sst [smem:[#allocation19_spill]] %s1366_s0 }
   0x2   :  { %8 = vsyncpa [#allocation4], 0 }
   0x3   :  { %10 = vsyncpa [#allocation4 + $0x1], 0 }
   0x4   :  { %11 = vsyncpa [#allocation7], 0 }
   0x5   :  { %13 = vsyncpa [#allocation7 + $0x1], 0 }
   0x6   :  { %14 = vsyncpa [#allocation5], 0 }
   0x7   :  { %16 = vsyncpa [#allocation5 + $0x1], 0  ;;  %s974_s12 = smov 0   ;;  %s976_s13 = smov 0  }
   0x8   :  { %s978_s14 = smov 0   ;;  %s980_s15 = smov 0  }
   0x9   :  { %s982_s16 = smov 0   ;;  %s984_s17 = smov 0  }
   0xa   :  { %s986_s18 = smov 0   ;;  %s988_s19 = smov 0  }
   0xb   :  { %s990_s20 = smov 0   ;;  %s992_s21 = smov 0  }
   0xc   :  { %s994_s22 = smov 0   ;;  %s996_s23 = smov 0  }
   0xd   :  { %s998_s24 = smov 0   ;;  %s1000_s25 = smov 0  }
   0xe LB: > { %1378 = sst [smem:[#allocation12_spill]] %s925_s20  ;;  %s512_s26 = sadd.s32 4294967295, %s945_s25   ;;  %s945_s25 = sphi %s1000_s25, %s22_s25   ;;  %s941_s24 = sphi %s998_s24, %s1410_s24   ;;  %s937_s23 = sphi %s996_s23, %s1421_s23   ;;  %s933_s22 = sphi %s994_s22, %s1408_s22   ;;  %s929_s21 = sphi %s992_s21, %s1420_s21   ;;  %s925_s20 = sphi %s990_s20, %s1419_s20   ;;  %s921_s19 = sphi %s988_s19, %s1418_s19   ;;  %s917_s18 = sphi %s986_s18, %s1417_s18   ;;  %s913_s17 = sphi %s984_s17, %s1416_s17   ;;  %s909_s16 = sphi %s982_s16, %s1415_s16   ;;  %s905_s15 = sphi %s980_s15, %s1414_s15   ;;  %s901_s14 = sphi %s978_s14, %s1413_s14   ;;  %s897_s13 = sphi %s976_s13, %s1412_s13   ;;  %s893_s12 = sphi %s974_s12, %s1411_s12  }
   0xf   : > { %1379 = sst [smem:[#allocation13_spill]] %s941_s24  ;;  %s31_s28 = sadd.s32 1, %s937_s23 }
  0x10   : > { %s34_s29 = sadd.s32 1, %s941_s24  ;;  %p32_p0 = scmp.ge.s32.totalorder %s31_s28, 2 }
  0x11   : > { %s41_s30 = sadd.s32 1, %s925_s20  ;;  %p48_p1 = scmp.ne.s32.totalorder %s925_s20, %s921_s19 }
  0x12   : > { %p49_p2 = scmp.eq.s32.totalorder %s945_s25, 0  ;;  %s1423_s28 = smov (%p32_p0, %s31_s28), 0 }
  0x13   : > { %1380 = sst [smem:[#allocation14_spill]] %s1423_s28  ;;  %s1425_s29 = smov (!%p32_p0, %s34_s29), %s941_s24 }
  0x14   : > { %s38_s4 = ssub.s32 %s937_s23, %s1423_s28  ;;  %p1057_p3 = por %p49_p2, %p48_p1 }
  0x15   : > { %p36_p4 = scmp.ge.s32.totalorder %s1425_s29, 2  ;;  %p39_p5 = scmp.eq.s32.totalorder %s38_s4, 0 }
  0x16   : > { %p54_p6 = scmp.ne.s32.totalorder %s921_s19, %s917_s18  ;;  %p1064_p7 = scmp.eq.s32.totalorder %s512_s26, 0 }
  0x17   : > { %s1427_s29 = smov (%p36_p4, %s1425_s29), 0  ;;  %s69_s11 = sadd.s32 1, %s913_s17 }
  0x18   : > { %1383 = sst [smem:[#allocation15_spill]] %s1427_s29  ;;  %p1075_p8 = por %p1064_p7, %p54_p6 }
  0x19   : > { %s1071_s7 = scalar_select %p39_p5, %s925_s20, %s41_s30  }
  0x1a   : > { %s1385_s8 = scalar_select %p1075_p8, 1, 0 }
  0x1b   : > { %1384 = sst [smem:[#allocation16_spill]] %s1071_s7  ;;  %s65_s9 = ssub.s32 %s941_s24, %s1427_s29 }
  0x1c   : > { %s66_s10 = sor.u32 %s65_s9, %s38_s4  ;;  %p76_p10 = scmp.ne.s32.totalorder %s913_s17, %s909_s16 }
  0x1d   : > { %p67_p9 = scmp.eq.s32.totalorder %s66_s10, 0  ;;  %p82_p11 = scmp.ne.s32.totalorder %s909_s16, %s905_s15 }
  0x1e   : > { %p119_p12 = scmp.eq.s32.totalorder %s65_s9, 0  ;;  %p1091_p13 = por %p76_p10, %p49_p2 }
  0x1f   : > { %s1087_s18 = scalar_select %p67_p9, %s913_s17, %s69_s11  }
  0x20   : > { %p1097_p0 = por %p82_p11, %p1064_p7  ;;  %s121_s4 = sadd.s32 1, %s901_s14 }
  0x21   : > { %1386 = sst [smem:[#allocation17_spill]] %s1087_s18  ;;  %p131_p1 = scmp.ne.s32.totalorder %s901_s14, %s897_s13 }
  0x22   : > { %s1388_s27 = scalar_select %p1097_p0, 1, 0 }
  0x23   : > { %s1105_s10 = scalar_select %p119_p12, %s901_s14, %s121_s4  }
  0x24   : > { %p132_p4 = scmp.eq.s32.totalorder %s512_s26, 3  ;;  %p137_p5 = scmp.ne.s32.totalorder %s897_s13, %s893_s12 }
  0x25   : > { %1389 = sst [smem:[#allocation18_spill]] %s1105_s10  ;;  %s1390_s15 = sadd.s32 4294967294, %s945_s25  }
  0x26   : > { %p138_p2 = scmp.eq.s32.totalorder %s1390_s15, 3  ;;  %p1113_p6 = por %p132_p4, %p131_p1 }
  0x27   : > { %p617_p7 = scmp.lt.s32.totalorder %s945_s25, 4  ;;  %s158_s11 = sand.u32 1, %s925_s20  }
  0x28   : > { %s1391_s9 = scalar_select %p1113_p6, 1, 0 }
  0x29   : > { %p1118_p9 = por %p138_p2, %p137_p5  ;;  %s516_s29 = sshll.u32 %s158_s11, 1 }
  0x2a   : > { %s531_s4 = sshll.u32 %s937_s23, 5  ;;  %s1393_s0 = sld [smem:[#allocation19_spill]] }
  0x2b   : > { %s1392_s6 = scalar_select %p1118_p9, 1, 0 }
  0x2c   : > { %s162_s15 = scalar_lea.vmem [#allocation3], %s516_s29  ;;  %p1133_p10 = pnand %p617_p7, %p1057_p3 }
  0x2d   : > { %s170_s18 = sshll.u32 %s162_s15, 4  ;;  %p1140_p11 = pnand %p617_p7, %p1091_p13  ;;  %s1129_s18 = int_to_ptr.vmem [resolvable:$true] %s170_s18 }
  0x2e   : > { %s159_s7 = scalar_lea.sflag [#allocation4], %s158_s11  ;;  %p737_p4 = pneg %p1133_p10 }
  0x30   : > { %s1127_s26 = scalar_lea.hbm %s1393_s0, %s531_s4  ;;  %s740_s15 = scalar_lea.hbm %s1393_s0, 64 }
  0x31   : > { %s735_s29 = scalar_lea.hbm %s1127_s26, 32  ;;  %p741_p13 = scmp.lt.u32.totalorder %s1127_s26, %s1393_s0 }
  0x32   : > { %p736_p1 = scmp.ne.s32.totalorder %s1127_s26, %s735_s29  ;;  %p742_p2 = scmp.lt.u32.totalorder %s740_s15, %s735_s29 }
  0x33   : > { %p744_p12 = scmp.lt.u32.totalorder %s735_s29, %s1127_s26 }
  0x34   : > { %p738_p3 = pnand %p737_p4, %p736_p1  ;;  %p743_p7 = por %p742_p2, %p741_p13 }
  0x36   : > { %p739_p5 = pneg %p738_p3  ;;  %p745_p9 = por %p744_p12, %p743_p7 }
  0x38   : > { %p746_p6 = pnand %p745_p9, %p739_p5 }
  0x3a   : > { %749 = shalt.err (!%p746_p6)
}
  0x3b   : > { %s750_s11 = scalar_lea.vmem %s1129_s18, 32  ;;  %s947_s5 = smov [#allocation3]  }
  0x3c   : > { %p751_p1 = scmp.ne.s32.totalorder %s1129_s18, %s750_s11  ;;  %s755_s4 = sshll.u32 %s947_s5, 4  ;;  %s756_s4 = int_to_ptr.vmem [resolvable:$false] %s755_s4 }
  0x3d   : > { %s757_s20 = scalar_lea.vmem %s756_s4, 64  ;;  %p758_p8 = scmp.lt.s32.totalorder %s1129_s18, %s756_s4 }
  0x3e   : > { %p753_p3 = pnand %p751_p1, %p737_p4  ;;  %p759_p13 = scmp.lt.s32.totalorder %s757_s20, %s750_s11 }
  0x40   : > { %p754_p0 = pneg %p753_p3  ;;  %p760_p2 = por %p759_p13, %p758_p8 }
  0x42   : > { %p761_p12 = pnand %p760_p2, %p754_p0 }
  0x44   : > { %764 = shalt.err (!%p761_p12)
}
  0x45   : > { %609 = dma.hbm_to_vmem [thread:$0]  (!%p1133_p10), %s1127_s26, 32, %s1129_s18, %s159_s7  }
  0x46   : > { %p204_p6 = scmp.lt.s32.totalorder %s945_s25, 5  ;;  %s177_s29 = sand.u32 1, %s913_s17  }
  0x47   : > { %s1396_s15 = sshll.u32 %s937_s23, 6  ;;  %p1397_p9 = scmp.ge.s32.totalorder %s945_s25, 1 }
  0x48   : > { %s187_s30 = sadd.s32 %s941_s24, %s1396_s15  ;;  %s519_s10 = sshll.u32 %s177_s29, 8 }
  0x49   : > { %p1177_p8 = pnand %p1397_p9, %p204_p6  ;;  %s522_s5 = sshll.u32 %s187_s30, 7 }
  0x4a   : > { %s1184_s0 = scalar_lea.hbm %s1367_s1, %s522_s5  ;;  %s181_s18 = scalar_lea.vmem [#allocation6], %s519_s10 }
  0x4b   : > { %s190_s26 = sshll.u32 %s181_s18, 4  ;;  %s1188_s7 = scalar_lea.sflag [#allocation7], %s177_s29  ;;  %s1186_s26 = int_to_ptr.vmem [resolvable:$true] %s190_s26 }
  0x4c   : > { %s765_s15 = scalar_lea.hbm %s1184_s0, 4096  ;;  %p767_p10 = pneg %p1140_p11 }
  0x4d   : > { %p766_p0 = scmp.ne.s32.totalorder %s1184_s0, %s765_s15  ;;  %s770_s4 = scalar_lea.hbm %s1367_s1, 16384 }
  0x4e   : > { %p771_p7 = scmp.lt.u32.totalorder %s1184_s0, %s1367_s1  ;;  %p772_p1 = scmp.lt.u32.totalorder %s770_s4, %s765_s15 }
  0x4f   : > { %p768_p4 = pnand %p767_p10, %p766_p0  ;;  %p774_p13 = scmp.lt.u32.totalorder %s765_s15, %s1184_s0 }
  0x50   : > { %p773_p3 = por %p772_p1, %p771_p7 }
  0x51   : > { %p769_p5 = pneg %p768_p4 }
  0x52   : > { %p775_p2 = por %p774_p13, %p773_p3 }
  0x54   : > { %p776_p12 = pnand %p775_p2, %p769_p5 }
  0x56   : > { %779 = shalt.err (!%p776_p12)
}
  0x57   : > { %s780_s29 = scalar_lea.vmem %s1186_s26, 4096  ;;  %s948_s10 = smov [#allocation6]  }
  0x58   : > { %p781_p6 = scmp.ne.s32.totalorder %s1186_s26, %s780_s29  ;;  %s785_s18 = sshll.u32 %s948_s10, 4  ;;  %s786_s18 = int_to_ptr.vmem [resolvable:$false] %s785_s18 }
  0x59   : > { %s787_s24 = scalar_lea.vmem %s786_s18, 8192  ;;  %p788_p4 = scmp.lt.s32.totalorder %s1186_s26, %s786_s18 }
  0x5a   : > { %p783_p9 = pnand %p781_p6, %p767_p10  ;;  %p789_p7 = scmp.lt.s32.totalorder %s787_s24, %s780_s29 }
  0x5c   : > { %p784_p0 = pneg %p783_p9  ;;  %p790_p1 = por %p789_p7, %p788_p4 }
  0x5e   : > { %p791_p3 = pnand %p790_p1, %p784_p0 }
  0x60   : > { %794 = shalt.err (!%p791_p3)
}
  0x61   : > { %s949_s15 = smov 256   ;;  %s950_s30 = smov 128  }
  0x62   : > { %s951_s5 = smov 8   ;;  %208 = sbr.rel (%p1177_p8) target bundleno = 408 (0x198), region = 32 }
  0x63   : > { %612 = dma.hbm_to_vmem [thread:$0]  (!%p1140_p11), %s1184_s0, 4096, %s1186_s26, %s1188_s7, %s949_s15, %s950_s30, %s951_s5  }
  0x64   : > { %s210_s4 = sand.u32 (!%p1177_p8), 1, %s921_s19   ;;  %p1399_p10 = scmp.ne.s32.totalorder (!%p1177_p8), %s1385_s8, 0 }
  0x65   : > { %s1219_s20 = sshll.u32 (!%p1177_p8), %s210_s4, 1  ;;  %s211_s29 = scalar_lea.sflag (!%p1177_p8), [#allocation4], %s210_s4 }
  0x66   : > { %s214_s10 = scalar_lea.vmem (!%p1177_p8), [#allocation3], %s1219_s20 }
  0x69   : > { %880 = dma.done.wait (%p1399_p10), %s211_s29, 32  }
  0x6a   : > { %882 = vsyncadd (%p1399_p10), %s211_s29, 4294967264  ;;  %s219_s28 = sand.u32 1, %s909_s16   ;;  %p1400_p11 = scmp.ne.s32.totalorder %s1388_s27, 0 }
  0x6b   : > { %s525_s0 = sshll.u32 %s219_s28, 8  ;;  %s220_s26 = scalar_lea.sflag [#allocation7], %s219_s28 }
  0x6c   : > { %s1227_s11 = scalar_lea.vmem [#allocation6], %s525_s0 }
  0x6d   : > { %884 = dma.done.wait (%p1400_p11), %s220_s26, 4096  }
  0x6e   : > { %886 = vsyncadd (%p1400_p11), %s220_s26, 4294963200  ;;  %s251_s7 = sand.u32 1, %s897_s13   ;;  %p255_p8 = scmp.lt.s32.totalorder %s933_s22, 1 }
  0x6f   : > { %s1244_s30 = scalar_lea.vmem [#allocation8], %s251_s7  ;;  %p526_p5 = scmp.ne.s32.totalorder %s929_s21, 0 }
  0x70   : > { %s1236_s8 = scalar_select %p255_p8, %s933_s22, 1 }
  0x71   : > { %261 = sbr.rel (%p526_p5) target bundleno = 120 (0x78), region = 44  ;;  %v952_v0 = vmov (!%p526_p5), 0.0  }
  0x72   : > { %s257_s15 = scalar_lea.vmem %s1368_s2, %s1236_s8  ;;  %262 = vst [vmem:[#allocation2] sm:$0x1] (!%p526_p5), %v952_v0 }
  0x78 PF: > { %v281_v1 = vld [vmem:[%s1227_s11 + $0x80] sm:$0xff]  ;;  %v282_v2 = vld [vmem:[%s1227_s11 + $0x88] sm:$0xff]  ;;  %v298_v4 = vlaneseq  ;;  %v283_v7 = vld [vmem:[%s1227_s11 + $0x90] sm:$0xff]  ;;  %p527_p13 = scmp.ne.s32.totalorder %s929_s21, 1 }
  0x79   : > { %v265_v3 = vld [vmem:[%s1227_s11] sm:$0xff]  ;;  %v568_v5 = vpack.c.bf16 %v282_v2, %v281_v1  ;;  %v266_v6 = vld [vmem:[%s1227_s11 + $0x8] sm:$0xff]  ;;  %v284_v8 = vld [vmem:[%s1227_s11 + $0x98] sm:$0xff] }
  0x7a   : > { %v570_v9 = vpack.c.bf16 %v266_v6, %v265_v3  ;;  %v572_v10 = vpack.c.bf16 %v284_v8, %v283_v7  ;;  %v267_v11 = vld [vmem:[%s1227_s11 + $0x10] sm:$0xff]  ;;  %v268_v12 = vld [vmem:[%s1227_s11 + $0x18] sm:$0xff]  ;;  %v285_v13 = vld [vmem:[%s1227_s11 + $0xa0] sm:$0xff]  ;;  %v299_v15 = vshrl.u32 %v298_v4, 7 }
  0x7b   : > { %569 = vmatprep.subr.bf16.mxu0 %v568_v5  ;;  %v286_v14 = vld [vmem:[%s1227_s11 + $0xa8] sm:$0xff]  ;;  %v574_v16 = vpack.c.bf16 %v268_v12, %v267_v11  ;;  %v269_v18 = vld [vmem:[%s1227_s11 + $0x20] sm:$0xff]  ;;  %v287_v20 = vld [vmem:[%s1227_s11 + $0xb0] sm:$0xff] }
  0x7c   : > { %571 = vmatpush3.bf16.msra.mxu0 %v570_v9  ;;  %v576_v17 = vpack.c.bf16 %v286_v14, %v285_v13  ;;  %v270_v19 = vld [vmem:[%s1227_s11 + $0x28] sm:$0xff]  ;;  %v288_v21 = vld [vmem:[%s1227_s11 + $0xb8] sm:$0xff]  ;;  %v304_v22 = vsub.s32 1, %v299_v15  ;;  %v271_v25 = vld [vmem:[%s1227_s11 + $0x30] sm:$0xff]  ;;  %v300_v53 = vsub.s32 0, %v299_v15 }
  0x7d   : > { %573 = vmatprep.subr.bf16.mxu0 %v572_v10  ;;  %v578_v23 = vpack.c.bf16 %v270_v19, %v269_v18  ;;  %v580_v24 = vpack.c.bf16 %v288_v21, %v287_v20  ;;  %v272_v26 = vld [vmem:[%s1227_s11 + $0x38] sm:$0xff]  ;;  %v289_v27 = vld [vmem:[%s1227_s11 + $0xc0] sm:$0xff]  ;;  %v290_v28 = vld [vmem:[%s1227_s11 + $0xc8] sm:$0xff] }
  0x7e   : > { %v264_v29 = vld [vmem:[%s214_s10] sm:$0x3]  ;;  %v582_v31 = vpack.c.bf16 %v272_v26, %v271_v25  ;;  %v584_v32 = vpack.c.bf16 %v290_v28, %v289_v27  ;;  %v273_v33 = vld [vmem:[%s1227_s11 + $0x40] sm:$0xff]  ;;  %v274_v34 = vld [vmem:[%s1227_s11 + $0x48] sm:$0xff] }
  0x7f   : > { %v305_v30 = vrot.slane %v264_v29, %v304_v22  ;;  %v291_v35 = vld [vmem:[%s1227_s11 + $0xd0] sm:$0xff]  ;;  %v292_v36 = vld [vmem:[%s1227_s11 + $0xd8] sm:$0xff]  ;;  %v586_v37 = vpack.c.bf16 %v274_v34, %v273_v33  ;;  %v293_v41 = vld [vmem:[%s1227_s11 + $0xe0] sm:$0xff]  ;;  %v301_v55 = vrot.slane %v264_v29, %v300_v53 }
  0x80   : > { %575 = vmatpush3.bf16.msra.mxu0 %v574_v16  ;;  %v588_v38 = vpack.c.bf16 %v292_v36, %v291_v35  ;;  %v275_v39 = vld [vmem:[%s1227_s11 + $0x50] sm:$0xff]  ;;  %v276_v40 = vld [vmem:[%s1227_s11 + $0x58] sm:$0xff]  ;;  %v294_v42 = vld [vmem:[%s1227_s11 + $0xe8] sm:$0xff] }
  0x81   : > { %577 = vmatprep.subr.bf16.mxu0 %v576_v17  ;;  %372 = vmatprep.mubr.f32.mxu0 %v305_v30  ;;  %v590_v43 = vpack.c.bf16 %v276_v40, %v275_v39  ;;  %v592_v44 = vpack.c.bf16 %v294_v42, %v293_v41  ;;  %v277_v45 = vld [vmem:[%s1227_s11 + $0x60] sm:$0xff]  ;;  %v278_v46 = vld [vmem:[%s1227_s11 + $0x68] sm:$0xff]  ;;  %v295_v47 = vld [vmem:[%s1227_s11 + $0xf0] sm:$0xff] }
  0x82   : > { %v296_v48 = vld [vmem:[%s1227_s11 + $0xf8] sm:$0xff]  ;;  %v594_v49 = vpack.c.bf16 %v278_v46, %v277_v45  ;;  %v279_v51 = vld [vmem:[%s1227_s11 + $0x70] sm:$0xff] }
  0x83   : > { %v596_v50 = vpack.c.bf16 %v296_v48, %v295_v47  ;;  %v280_v52 = vld [vmem:[%s1227_s11 + $0x78] sm:$0xff] }
  0x84   : > { %579 = vmatpush3.bf16.msra.mxu0 %v578_v23  ;;  %v598_v54 = vpack.c.bf16 %v280_v52, %v279_v51  ;;  %v263_v57 = vld [vmem:[#allocation2] sm:$0x1] }
  0x85   : > { %581 = vmatprep.subr.bf16.mxu0 %v580_v24  ;;  %v385_v62 = vld [vmem:[%s257_s15] sm:$0x1] (!%p527_p13) }
  0x88   : > { %583 = vmatpush3.bf16.msra.mxu0 %v582_v31 }
  0x89   : > { %585 = vmatprep.subr.bf16.mxu0 %v584_v32 }
  0x8c   : > { %587 = vmatpush3.bf16.msra.mxu0 %v586_v37 }
  0x8d   : > { %589 = vmatprep.subr.bf16.mxu0 %v588_v38 }
  0x90   : > { %591 = vmatpush3.bf16.msra.mxu0 %v590_v43 }
  0x91   : > { %593 = vmatprep.subr.bf16.mxu0 %v592_v44 }
  0x94   : > { %595 = vmatpush3.bf16.msra.mxu0 %v594_v49 }
  0x95   : > { %597 = vmatprep.subr.bf16.mxu0 %v596_v50 }
  0x98   : > { %599 = vmatpush3.bf16.msra.mxu0 %v598_v54 }
  0x9b   : > { %373 = vmatmul.mubr.f32.vlgmr.msra.gmra.mrb[0].mxu0 %v301_v55 }
 0x16e   : > { %v565_v56 = vpop.f32.mrb[0].mxu0  ;;  %383 = sbr.rel (%p527_p13) target bundleno = 383 (0x17f), region = 48 }
 0x16f   : > { %v566_v58 = vpop.f32.mrb[1].mxu0 }
 0x170   : > { %v567_v59 = vadd.f32 %v566_v58, %v565_v56 }
 0x172   : > { %v378_v60 = vadd.f32 %v567_v59, %v263_v57 }
 0x174   : > { %379 = vst [vmem:[#allocation2] sm:$0x1] %v378_v60 }
 0x17b   : > { %v384_v61 = vld [vmem:[#allocation2] sm:$0x1] }
 0x17c   : > { %v386_v63 = vadd.f32 %v385_v62, %v384_v61 }
 0x17e   : > { %387 = vst [vmem:[%s1244_s30] sm:$0x1] %v386_v63 }
 0x17f PF: > { %s528_s4 = sshll.u32 %s933_s22, 4  ;;  %s401_s10 = sshll.u32 %s1244_s30, 4  ;;  %s402_s10 = int_to_ptr.vmem [resolvable:$true] %s401_s10 }
 0x180   : > { %s1292_s21 = scalar_lea.hbm %s1369_s3, %s528_s4  ;;  %s389_s28 = scalar_lea.sflag [#allocation5], %s251_s7 }
 0x181   : > { %s795_s0 = scalar_lea.vmem %s402_s10, 16  ;;  %p1401_p12 = scmp.ne.s32.totalorder %s1391_s9, 0 }
 0x182   : > { %p796_p2 = scmp.ne.s32.totalorder %s402_s10, %s795_s0  ;;  %s953_s26 = smov [#allocation8]  }
 0x183   : > { %s799_s11 = sshll.u32 %s953_s26, 4  ;;  %s800_s11 = int_to_ptr.vmem [resolvable:$false] %s799_s11 }
 0x184   : > { %p797_p6 = pnand %p796_p2, %p1401_p12  ;;  %s801_s8 = scalar_lea.vmem %s800_s11, 32 }
 0x185   : > { %p802_p0 = scmp.lt.s32.totalorder %s402_s10, %s800_s11  ;;  %p803_p4 = scmp.lt.s32.totalorder %s801_s8, %s795_s0 }
 0x186   : > { %p798_p9 = pneg %p797_p6 }
 0x187   : > { %p804_p7 = por %p803_p4, %p802_p0 }
 0x189   : > { %p805_p1 = pnand %p804_p7, %p798_p9 }
 0x18b   : > { %808 = shalt.err (!%p805_p1)
}
 0x18c   : > { %s809_s22 = scalar_lea.hbm %s1292_s21, 16  ;;  %s813_s24 = scalar_lea.hbm %s1369_s3, 32 }
 0x18d   : > { %p810_p3 = scmp.ne.s32.totalorder %s1292_s21, %s809_s22  ;;  %p814_p8 = scmp.lt.u32.totalorder %s1292_s21, %s1369_s3 }
 0x18e   : > { %p815_p5 = scmp.lt.u32.totalorder %s813_s24, %s809_s22  ;;  %p817_p2 = scmp.lt.u32.totalorder %s809_s22, %s1292_s21 }
 0x18f   : > { %p811_p10 = pnand %p810_p3, %p1401_p12 }
 0x190   : > { %p816_p13 = por %p815_p5, %p814_p8 }
 0x191   : > { %p812_p11 = pneg %p811_p10 }
 0x192   : > { %p818_p6 = por %p817_p2, %p816_p13 }
 0x194   : > { %p819_p9 = pnand %p818_p6, %p812_p11 }
 0x196   : > { %822 = shalt.err (!%p819_p9)
}
 0x197   : > { %604 = dma.vmem_to_hbm [thread:$0]  (%p1401_p12), %s402_s10, 16, %s1292_s21, %s389_s28  }
 0x198 PF: > { %p618_p0 = scmp.ge.s32.totalorder %s945_s25, 2  ;;  %s413_s27 = sand.u32 1, %s893_s12  }
 0x199   : > { %p1402_p4 = scmp.ne.s32.totalorder %s1392_s6, 0  ;;  %s414_s5 = scalar_lea.sflag [#allocation5], %s413_s27 }
 0x19b   : > { %p614_p7 = pnand %p618_p0, %p1402_p4 }
 0x19d   : > { %888 = dma.done.wait (!%p614_p7), %s414_s5, 16  }
 0x19e   : > { %890 = vsyncadd (!%p614_p7), %s414_s5, 4294967280  ;;  %s22_s25 = sadd.s32 1, %s945_s25   ;;  %s1404_s9 = sld [smem:[#allocation18_spill]] }
 0x19f   : > { %p1319_p1 = scmp.ge.s32.totalorder %s22_s25, 6   ;;  %s1405_s20 = sld [smem:[#allocation17_spill]] }
 0x1a0   : > { %s1406_s29 = sld [smem:[#allocation12_spill]]  ;;  %s1407_s21 = sld [smem:[#allocation16_spill]] }
 0x1a1   : > { %s1408_s22 = sld [smem:[#allocation13_spill]]  ;;  %s1409_s6 = sld [smem:[#allocation14_spill]] }
 0x1a2   : > { %s1410_s24 = sld [smem:[#allocation15_spill]]  ;;  %s1411_s12 = smov %s897_s13 }
 0x1a3   : > { %s1412_s13 = smov %s901_s14  ;;  %s1414_s15 = smov %s909_s16 }
 0x1a4   : > { %s1413_s14 = smov %s1404_s9  ;;  %s1415_s16 = smov %s913_s17 }
 0x1a5   : > { %s1416_s17 = smov %s1405_s20  ;;  %s1417_s18 = smov %s921_s19 }
 0x1a6   : > { %s1418_s19 = smov %s1406_s29  ;;  %s1419_s20 = smov %s1407_s21 }
 0x1a7   : > { %s1420_s21 = smov %s937_s23  ;;  %s1421_s23 = smov %s1409_s6 }
 0x1a8   :  { %21 = sbr.rel (!%p1319_p1) target bundleno = 14 (0xe), region = 101 }
 0x1af   :  { %418 = vsyncpa [#allocation4], 1 }
 0x1b0   :  { %420 = vsyncpa [#allocation4 + $0x1], 1 }
 0x1b1   :  { %421 = vsyncpa [#allocation7], 1 }
 0x1b2   :  { %423 = vsyncpa [#allocation7 + $0x1], 1 }
 0x1b3   :  { %424 = vsyncpa [#allocation5], 1 }
 0x1b4   :  { %426 = vsyncpa [#allocation5 + $0x1], 1 }

</bundles_post_ra>
